<compile_context>
chip_gen: v7x
topology: tpu7x:2x2x1
jax: 0.10.0
libtpu: 0.0.40
codegen_flags: <defaults>
</compile_context>

<pallas_src>
import functools
import math

import numpy as np
import jax
import jax.numpy as jnp
from jax.experimental import pallas as pl
from jax.experimental.pallas import tpu as pltpu

_EPS = 1e-4  # BatchNorm2d eps in the reference module


# ----------------------------------------------------------------------------
# Pallas kernel: tiled bf16 matmul (f32 accumulate) + bias + LeakyReLU(0.1).
# BN scale is already folded into the weight matrix, so the epilogue is just
# an add + a select (pure VPU, no transcendentals).
# ----------------------------------------------------------------------------
def _matmul_bias_lrelu_kernel(x_ref, w_ref, b_ref, o_ref, acc_ref):
    k = pl.program_id(2)

    @pl.when(k == 0)
    def _():
        acc_ref[...] = jnp.zeros_like(acc_ref)

    acc_ref[...] += jnp.dot(x_ref[...], w_ref[...],
                            preferred_element_type=jnp.float32)

    @pl.when(k == pl.num_programs(2) - 1)
    def _():
        y = acc_ref[...] + b_ref[...]
        o_ref[...] = jnp.where(y > 0, y, 0.1 * y).astype(o_ref.dtype)


def _rup(a, b):
    return ((a + b - 1) // b) * b


@functools.lru_cache(maxsize=None)
def _build_fused_matmul(Mp, Kp, Np, bm, bk, bn):
    grid = (Mp // bm, Np // bn, Kp // bk)
    return pl.pallas_call(
        _matmul_bias_lrelu_kernel,
        out_shape=jax.ShapeDtypeStruct((Mp, Np), jnp.float32),
        grid_spec=pltpu.PrefetchScalarGridSpec(
            num_scalar_prefetch=0,
            grid=grid,
            in_specs=[
                pl.BlockSpec((bm, bk), lambda i, j, k: (i, k)),   # activations (bf16)
                pl.BlockSpec((bk, bn), lambda i, j, k: (k, j)),   # scale-folded weights (bf16)
                pl.BlockSpec((1, bn), lambda i, j, k: (0, j)),    # BN bias (f32)
            ],
            out_specs=pl.BlockSpec((bm, bn), lambda i, j, k: (i, j)),
            scratch_shapes=[pltpu.VMEM((bm, bn), jnp.float32)],
        ),
        compiler_params=pltpu.CompilerParams(
            dimension_semantics=("parallel", "parallel", "arbitrary")),
    )


# ----------------------------------------------------------------------------
# CBL parameters: raw (PyTorch-style) and GEMM-packed (built once).
# ----------------------------------------------------------------------------
def make_raw_cbl(key, cin, cout):
    kw, kg, kb, km, kv = jax.random.split(key, 5)
    w = jax.random.normal(kw, (cout, cin, 1, 1), jnp.float32) / math.sqrt(cin)
    gamma = 1.0 + 0.05 * jax.random.normal(kg, (cout,), jnp.float32)
    beta = 0.05 * jax.random.normal(kb, (cout,), jnp.float32)
    mean = 0.05 * jax.random.normal(km, (cout,), jnp.float32)
    var = 1.0 + 0.05 * jnp.abs(jax.random.normal(kv, (cout,), jnp.float32))
    return {"w": w, "gamma": gamma, "beta": beta, "mean": mean, "var": var}


def pack_cbl(raw):
    """Build GEMM-ready params once: fold BN scale, pad to tiles, cast bf16."""
    cout, cin = raw["w"].shape[:2]
    scale = raw["gamma"] / jnp.sqrt(raw["var"] + _EPS)
    bias = raw["beta"] - raw["mean"] * scale
    wmat = raw["w"][:, :, 0, 0].T * scale[None, :]          # (cin, cout), scale folded
    bk = min(512, _rup(cin, 128))                            # full K when small (256 here)
    bn = min(512, _rup(cout, 128))                           # full Cout (128 here)
    Kp, Np = _rup(cin, bk), _rup(cout, bn)
    wmat = jnp.pad(wmat, ((0, Kp - cin), (0, Np - cout))).astype(jnp.bfloat16)
    bias = jnp.pad(bias, (0, Np - cout)).reshape(1, Np).astype(jnp.float32)
    return {"w": wmat, "b": bias, "cin": cin, "cout": cout, "bk": bk, "bn": bn}


# ----------------------------------------------------------------------------
# Fused 1x1 Conv + BN + LeakyReLU on NHWC activations (Pallas matmul).
# ----------------------------------------------------------------------------
def cbl_1x1_pallas(x_nhwc, p):
    N, H, W, C = x_nhwc.shape
    M = N * H * W
    Kp, Np = p["w"].shape
    bm = 256 if M >= 512 else _rup(M, 16)   # 16: bf16 sublane packing
    Mp = _rup(M, bm)
    x2 = x_nhwc.reshape(M, C).astype(jnp.bfloat16)
    if Mp != M or Kp != C:
        x2 = jnp.pad(x2, ((0, Mp - M), (0, Kp - C)))
    out = _build_fused_matmul(Mp, Kp, Np, bm, p["bk"], p["bn"])(x2, p["w"], p["b"])
    out = out[:M, :p["cout"]]
    return out.reshape(N, H, W, p["cout"])


# ----------------------------------------------------------------------------
# Bilinear x2 upsample, align_corners=True (plain-JAX glue, fused under jit).
# Expressed as two tiny matmuls against constant interpolation matrices.
# ----------------------------------------------------------------------------
def _interp_matrix(n_in, n_out):
    if n_in == 1:
        return jnp.ones((n_out, 1), jnp.float32)
    src = np.arange(n_out, dtype=np.float64) * (n_in - 1) / (n_out - 1)
    lo = np.clip(np.floor(src).astype(np.int64), 0, n_in - 2)
    frac = (src - lo).astype(np.float32)
    m = np.zeros((n_out, n_in), np.float32)
    rows = np.arange(n_out)
    m[rows, lo] += 1.0 - frac
    m[rows, lo + 1] += frac
    return jnp.asarray(m)


def bilinear_up2x_align_corners_nhwc(x_nhwc):
    N, H, W, C = x_nhwc.shape
    Ah = _interp_matrix(H, 2 * H)   # (2H, H) constant
    Aw = _interp_matrix(W, 2 * W)   # (2W, W) constant
    t = jnp.einsum('oy,nyxc->noxc', Ah, x_nhwc, precision=jax.lax.Precision.HIGHEST)
    return jnp.einsum('px,noxc->nopc', Aw, t, precision=jax.lax.Precision.HIGHEST)


# ----------------------------------------------------------------------------
# Process3 forward (NCHW in / NCHW out, matching the PyTorch module).
# ----------------------------------------------------------------------------
def process3_forward(x_nchw, y38_nchw, packed_params):
    x = jnp.transpose(x_nchw, (0, 2, 3, 1))      # NCHW -> NHWC
    y = jnp.transpose(y38_nchw, (0, 2, 3, 1))
    tmp0 = cbl_1x1_pallas(x, packed_params["cbl_s_0"])
    tmp1 = cbl_1x1_pallas(y, packed_params["up_sample_1"])
    tmp1 = bilinear_up2x_align_corners_nhwc(tmp1)
    out = jnp.concatenate([tmp0, tmp1], axis=-1)  # torch.cat(dim=1) in NHWC
    return jnp.transpose(out, (0, 3, 1, 2))       # NHWC -> NCHW


# ----------------------------------------------------------------------------
# Pure-JAX f32 reference (mirrors the PyTorch module) for correctness check.
# ----------------------------------------------------------------------------
def _cbl_ref(x_nchw, rp):
    w2d = rp["w"][:, :, 0, 0]                                   # (cout, cin)
    y = jnp.einsum('nchw,oc->nohw', x_nchw, w2d,
                   precision=jax.lax.Precision.HIGHEST)
    scale = rp["gamma"] / jnp.sqrt(rp["var"] + _EPS)
    bias = rp["beta"] - rp["mean"] * scale
    y = y * scale[None, :, None, None] + bias[None, :, None, None]
    return jnp.where(y > 0, y, 0.1 * y)


def _upsample_ref(x_nchw):
    N, C, H, W = x_nchw.shape
    Ah = _interp_matrix(H, 2 * H)
    Aw = _interp_matrix(W, 2 * W)
    t = jnp.einsum('oy,ncyx->ncox', Ah, x_nchw,
                   precision=jax.lax.Precision.HIGHEST)
    return jnp.einsum('px,ncox->ncop', Aw, t,
                      precision=jax.lax.Precision.HIGHEST)


def process3_ref(x_nchw, y38_nchw, raw_params):
    tmp0 = _cbl_ref(x_nchw, raw_params["cbl_s_0"])
    tmp1 = _upsample_ref(_cbl_ref(y38_nchw, raw_params["up_sample_1"]))
    return jnp.concatenate([tmp0, tmp1], axis=1)


# ----------------------------------------------------------------------------
if __name__ == "__main__":
    key = jax.random.PRNGKey(0)
    k0, k1, kx, ky = jax.random.split(key, 4)

    raw_params = {
        "cbl_s_0": make_raw_cbl(k0, 256, 128),
        "up_sample_1": make_raw_cbl(k1, 256, 128),
    }
    packed_params = {name: pack_cbl(rp) for name, rp in raw_params.items()}

    # Small shapes consistent with the module: x spatial must be 2x y38 spatial.
    x = jax.random.normal(kx, (2, 256, 16, 16), jnp.float32)    # NCHW
    y38 = jax.random.normal(ky, (2, 256, 8, 8), jnp.float32)    # NCHW

    # One jit over the whole forward: all glue (transpose/pad/upsample/concat)
    # fuses into a single XLA program around the Pallas calls.
    fwd = jax.jit(lambda a, b: process3_forward(a, b, packed_params))

    out = jax.block_until_ready(fwd(x, y38))
    assert out.shape == (2, 256, 16, 16), out.shape
    assert bool(jnp.all(jnp.isfinite(out)))

    ref = jax.block_until_ready(process3_ref(x, y38, raw_params))
    max_err = float(jnp.max(jnp.abs(out - ref)))
    # bf16 operands / f32 accumulate vs f32 reference -> relaxed tolerance.
    assert max_err < 7.5e-2, f"max abs err {max_err}"

    print("KERNEL_OK")
</pallas_src>

<mosaic_0001>
module attributes {stable_mosaic.version = 11 : i64} {
  func.func @_matmul_bias_lrelu_kernel(%arg0: i32, %arg1: i32, %arg2: i32, %arg3: memref<128x256xbf16, #tpu.memory_space<vmem>>, %arg4: memref<256x128xbf16, #tpu.memory_space<vmem>>, %arg5: memref<1x128xf32, #tpu.memory_space<vmem>>, %arg6: memref<128x128xf32, #tpu.memory_space<vmem>>, %arg7: memref<128x128xf32, #tpu.memory_space<vmem>>) attributes {dimension_semantics = [#tpu.dimension_semantics<parallel>, #tpu.dimension_semantics<parallel>, #tpu.dimension_semantics<arbitrary>], iteration_bounds = array<i64: 1, 1, 1>, scalar_prefetch = 0 : i64, scratch_operands = 1 : i64, tpu.core_type = #tpu.core_type<tc>, window_params = [{transform_indices = @transform_0, window_bounds = array<i64: 128, 256>}, {transform_indices = @transform_1, window_bounds = array<i64: 256, 128>}, {transform_indices = @transform_2, window_bounds = array<i64: 1, 128>}, {transform_indices = @transform_3, window_bounds = array<i64: 128, 128>}]} {
    %c0_i32 = arith.constant 0 : i32
    %0 = arith.cmpi eq, %arg2, %c0_i32 : i32
    %1 = arith.extui %0 : i1 to i32
    %c0_i32_0 = arith.constant 0 : i32
    %2 = arith.cmpi ne, %1, %c0_i32_0 : i32
    scf.if %2 {
      %cst_10 = arith.constant 0.000000e+00 : f32
      %12 = vector.broadcast %cst_10 : f32 to vector<128x128xf32>
      %c0_11 = arith.constant 0 : index
      %c0_12 = arith.constant 0 : index
      %13 = vector.load %arg7[%c0_11, %c0_12] : memref<128x128xf32, #tpu.memory_space<vmem>>, vector<128x128xf32>
      tpu.vector_store %arg7[%c0_11, %c0_12], %12 {strides = array<i32>} : memref<128x128xf32, #tpu.memory_space<vmem>>, vector<128x128xf32>,
    } else {
    }
    %c0 = arith.constant 0 : index
    %c0_1 = arith.constant 0 : index
    %3 = vector.load %arg7[%c0, %c0_1] : memref<128x128xf32, #tpu.memory_space<vmem>>, vector<128x128xf32>
    %c0_2 = arith.constant 0 : index
    %c0_3 = arith.constant 0 : index
    %4 = vector.load %arg3[%c0_2, %c0_3] : memref<128x256xbf16, #tpu.memory_space<vmem>>, vector<128x256xbf16>
    %c0_4 = arith.constant 0 : index
    %c0_5 = arith.constant 0 : index
    %5 = vector.load %arg4[%c0_4, %c0_5] : memref<256x128xbf16, #tpu.memory_space<vmem>>, vector<256x128xbf16>
    %cst = arith.constant dense<0.000000e+00> : vector<128x128xf32>
    %6 = tpu.matmul %4, %5, %cst {dimension_numbers = #tpu.dot_dimension_numbers<[1], [0], [0], [1], [0, 0, 1, 1], [], []>} : vector<128x256xbf16>, vector<256x128xbf16>, vector<128x128xf32> -> vector<128x128xf32>
    %7 = arith.addf %3, %6 : vector<128x128xf32>
    %c0_6 = arith.constant 0 : index
    %c0_7 = arith.constant 0 : index
    %8 = vector.load %arg7[%c0_6, %c0_7] : memref<128x128xf32, #tpu.memory_space<vmem>>, vector<128x128xf32>
    tpu.vector_store %arg7[%c0_6, %c0_7], %7 {strides = array<i32>} : memref<128x128xf32, #tpu.memory_space<vmem>>, vector<128x128xf32>,
    %c0_i32_8 = arith.constant 0 : i32
    %9 = arith.cmpi eq, %arg2, %c0_i32_8 : i32
    %10 = arith.extui %9 : i1 to i32
    %c0_i32_9 = arith.constant 0 : i32
    %11 = arith.cmpi ne, %10, %c0_i32_9 : i32
    scf.if %11 {
      %c0_10 = arith.constant 0 : index
      %c0_11 = arith.constant 0 : index
      %12 = vector.load %arg7[%c0_10, %c0_11] : memref<128x128xf32, #tpu.memory_space<vmem>>, vector<128x128xf32>
      %c0_12 = arith.constant 0 : index
      %c0_13 = arith.constant 0 : index
      %13 = vector.load %arg5[%c0_12, %c0_13] : memref<1x128xf32, #tpu.memory_space<vmem>>, vector<1x128xf32>
      %14 = vector.broadcast %13 : vector<1x128xf32> to vector<128x128xf32>
      %15 = arith.addf %12, %14 : vector<128x128xf32>
      %cst_14 = arith.constant 0.000000e+00 : f32
      %16 = vector.broadcast %cst_14 : f32 to vector<128x128xf32>
      %17 = arith.cmpf ogt, %15, %16 : vector<128x128xf32>
      %cst_15 = arith.constant 1.000000e-01 : f32
      %18 = vector.broadcast %cst_15 : f32 to vector<128x128xf32>
      %19 = arith.mulf %18, %15 : vector<128x128xf32>
      %20 = arith.select %17, %15, %19 : vector<128x128xi1>, vector<128x128xf32>
      %c0_16 = arith.constant 0 : index
      %c0_17 = arith.constant 0 : index
      %21 = vector.load %arg6[%c0_16, %c0_17] : memref<128x128xf32, #tpu.memory_space<vmem>>, vector<128x128xf32>
      tpu.vector_store %arg6[%c0_16, %c0_17], %20 {strides = array<i32>} : memref<128x128xf32, #tpu.memory_space<vmem>>, vector<128x128xf32>,
    } else {
    }
    return
  }
  func.func @transform_0(%arg0: i32, %arg1: i32, %arg2: i32) -> (i32, i32) {
    %c0_i32 = arith.constant 0 : i32
    return %arg0, %arg2 : i32, i32
  }
  func.func @transform_1(%arg0: i32, %arg1: i32, %arg2: i32) -> (i32, i32) {
    %c0_i32 = arith.constant 0 : i32
    return %arg2, %arg1 : i32, i32
  }
  func.func @transform_2(%arg0: i32, %arg1: i32, %arg2: i32) -> (i32, i32) {
    %c0_i32 = arith.constant 0 : i32
    %c0_i32_0 = arith.constant 0 : i32
    return %c0_i32, %arg1 : i32, i32
  }
  func.func @transform_3(%arg0: i32, %arg1: i32, %arg2: i32) -> (i32, i32) {
    %c0_i32 = arith.constant 0 : i32
    return %arg0, %arg1 : i32, i32
  }
}

module attributes {stable_mosaic.version = 11 : i64} {
  func.func @_matmul_bias_lrelu_kernel(%arg0: i32, %arg1: i32, %arg2: i32, %arg3: memref<256x256xbf16, #tpu.memory_space<vmem>>, %arg4: memref<256x128xbf16, #tpu.memory_space<vmem>>, %arg5: memref<1x128xf32, #tpu.memory_space<vmem>>, %arg6: memref<256x128xf32, #tpu.memory_space<vmem>>, %arg7: memref<256x128xf32, #tpu.memory_space<vmem>>) attributes {dimension_semantics = [#tpu.dimension_semantics<parallel>, #tpu.dimension_semantics<parallel>, #tpu.dimension_semantics<arbitrary>], iteration_bounds = array<i64: 2, 1, 1>, scalar_prefetch = 0 : i64, scratch_operands = 1 : i64, tpu.core_type = #tpu.core_type<tc>, window_params = [{transform_indices = @transform_0, window_bounds = array<i64: 256, 256>}, {transform_indices = @transform_1, window_bounds = array<i64: 256, 128>}, {transform_indices = @transform_2, window_bounds = array<i64: 1, 128>}, {transform_indices = @transform_3, window_bounds = array<i64: 256, 128>}]} {
    %c0_i32 = arith.constant 0 : i32
    %0 = arith.cmpi eq, %arg2, %c0_i32 : i32
    %1 = arith.extui %0 : i1 to i32
    %c0_i32_0 = arith.constant 0 : i32
    %2 = arith.cmpi ne, %1, %c0_i32_0 : i32
    scf.if %2 {
      %cst_10 = arith.constant 0.000000e+00 : f32
      %12 = vector.broadcast %cst_10 : f32 to vector<256x128xf32>
      %c0_11 = arith.constant 0 : index
      %c0_12 = arith.constant 0 : index
      %13 = vector.load %arg7[%c0_11, %c0_12] : memref<256x128xf32, #tpu.memory_space<vmem>>, vector<256x128xf32>
      tpu.vector_store %arg7[%c0_11, %c0_12], %12 {strides = array<i32>} : memref<256x128xf32, #tpu.memory_space<vmem>>, vector<256x128xf32>,
    } else {
    }
    %c0 = arith.constant 0 : index
    %c0_1 = arith.constant 0 : index
    %3 = vector.load %arg7[%c0, %c0_1] : memref<256x128xf32, #tpu.memory_space<vmem>>, vector<256x128xf32>
    %c0_2 = arith.constant 0 : index
    %c0_3 = arith.constant 0 : index
    %4 = vector.load %arg3[%c0_2, %c0_3] : memref<256x256xbf16, #tpu.memory_space<vmem>>, vector<256x256xbf16>
    %c0_4 = arith.constant 0 : index
    %c0_5 = arith.constant 0 : index
    %5 = vector.load %arg4[%c0_4, %c0_5] : memref<256x128xbf16, #tpu.memory_space<vmem>>, vector<256x128xbf16>
    %cst = arith.constant dense<0.000000e+00> : vector<256x128xf32>
    %6 = tpu.matmul %4, %5, %cst {dimension_numbers = #tpu.dot_dimension_numbers<[1], [0], [0], [1], [0, 0, 1, 1], [], []>} : vector<256x256xbf16>, vector<256x128xbf16>, vector<256x128xf32> -> vector<256x128xf32>
    %7 = arith.addf %3, %6 : vector<256x128xf32>
    %c0_6 = arith.constant 0 : index
    %c0_7 = arith.constant 0 : index
    %8 = vector.load %arg7[%c0_6, %c0_7] : memref<256x128xf32, #tpu.memory_space<vmem>>, vector<256x128xf32>
    tpu.vector_store %arg7[%c0_6, %c0_7], %7 {strides = array<i32>} : memref<256x128xf32, #tpu.memory_space<vmem>>, vector<256x128xf32>,
    %c0_i32_8 = arith.constant 0 : i32
    %9 = arith.cmpi eq, %arg2, %c0_i32_8 : i32
    %10 = arith.extui %9 : i1 to i32
    %c0_i32_9 = arith.constant 0 : i32
    %11 = arith.cmpi ne, %10, %c0_i32_9 : i32
    scf.if %11 {
      %c0_10 = arith.constant 0 : index
      %c0_11 = arith.constant 0 : index
      %12 = vector.load %arg7[%c0_10, %c0_11] : memref<256x128xf32, #tpu.memory_space<vmem>>, vector<256x128xf32>
      %c0_12 = arith.constant 0 : index
      %c0_13 = arith.constant 0 : index
      %13 = vector.load %arg5[%c0_12, %c0_13] : memref<1x128xf32, #tpu.memory_space<vmem>>, vector<1x128xf32>
      %14 = vector.broadcast %13 : vector<1x128xf32> to vector<256x128xf32>
      %15 = arith.addf %12, %14 : vector<256x128xf32>
      %cst_14 = arith.constant 0.000000e+00 : f32
      %16 = vector.broadcast %cst_14 : f32 to vector<256x128xf32>
      %17 = arith.cmpf ogt, %15, %16 : vector<256x128xf32>
      %cst_15 = arith.constant 1.000000e-01 : f32
      %18 = vector.broadcast %cst_15 : f32 to vector<256x128xf32>
      %19 = arith.mulf %18, %15 : vector<256x128xf32>
      %20 = arith.select %17, %15, %19 : vector<256x128xi1>, vector<256x128xf32>
      %c0_16 = arith.constant 0 : index
      %c0_17 = arith.constant 0 : index
      %21 = vector.load %arg6[%c0_16, %c0_17] : memref<256x128xf32, #tpu.memory_space<vmem>>, vector<256x128xf32>
      tpu.vector_store %arg6[%c0_16, %c0_17], %20 {strides = array<i32>} : memref<256x128xf32, #tpu.memory_space<vmem>>, vector<256x128xf32>,
    } else {
    }
    return
  }
  func.func @transform_0(%arg0: i32, %arg1: i32, %arg2: i32) -> (i32, i32) {
    %c0_i32 = arith.constant 0 : i32
    return %arg0, %arg2 : i32, i32
  }
  func.func @transform_1(%arg0: i32, %arg1: i32, %arg2: i32) -> (i32, i32) {
    %c0_i32 = arith.constant 0 : i32
    return %arg2, %arg1 : i32, i32
  }
  func.func @transform_2(%arg0: i32, %arg1: i32, %arg2: i32) -> (i32, i32) {
    %c0_i32 = arith.constant 0 : i32
    %c0_i32_0 = arith.constant 0 : i32
    return %c0_i32, %arg1 : i32, i32
  }
  func.func @transform_3(%arg0: i32, %arg1: i32, %arg2: i32) -> (i32, i32) {
    %c0_i32 = arith.constant 0 : i32
    return %arg0, %arg1 : i32, i32
  }
}

</mosaic_0001>

<bundles_post_ra>
// kernel: _lambda_.3
= control target key start
LH: loop header
LB: loop body
LE: loop exit
PB: predicated region body
PF: predicated region fallthrough
CT: control target
= control target key end

     0   :  { %s852_s1 = inlined_call_operand.vmem [shape: bf16[256,128], index: 1, kind: input, shape index: {}]   ;;  %s853_s0 = inlined_call_operand.vmem [shape: bf16[128,256], index: 0, kind: input, shape index: {}]   ;;  %s854_s2 = inlined_call_operand.vmem [shape: f32[1,128], index: 2, kind: input, shape index: {}]   ;;  %s855_s3 = inlined_call_operand.vmem [shape: f32[128,128], index: 3, kind: output, shape index: {}]  }
   0x1   :  { %v627_v0 = vld [vmem:[%s852_s1 + $0x40] sm:$0xff]   ;;  %v629_v2 = vld [vmem:[%s852_s1 + $0x48] sm:$0xff]   ;;  %v631_v4 = vld [vmem:[%s852_s1 + $0x50] sm:$0xff]  }
   0x2   :  { %v628_v1 = vld [vmem:[%s852_s1] sm:$0xff]   ;;  %547 = vmatprep.subr.bf16.mxu0 %v627_v0  ;;  %611 = vmatprep.subr.bf16.mxu1 %v627_v0  ;;  %v630_v3 = vld [vmem:[%s852_s1 + $0x8] sm:$0xff]   ;;  %v632_v5 = vld [vmem:[%s852_s1 + $0x10] sm:$0xff]  }
   0x3   :  { %548 = vmatpush3.bf16.msra.mxu0 %v628_v1  ;;  %619 = vmatpush3.bf16.msra.mxu1 %v628_v1  ;;  %v633_v6 = vld [vmem:[%s852_s1 + $0x58] sm:$0xff]   ;;  %v635_v8 = vld [vmem:[%s852_s1 + $0x60] sm:$0xff]   ;;  %v637_v10 = vld [vmem:[%s852_s1 + $0x68] sm:$0xff]  }
   0x4   :  { %549 = vmatprep.subr.bf16.mxu0 %v629_v2  ;;  %612 = vmatprep.subr.bf16.mxu1 %v629_v2  ;;  %v634_v7 = vld [vmem:[%s852_s1 + $0x18] sm:$0xff]   ;;  %v636_v9 = vld [vmem:[%s852_s1 + $0x20] sm:$0xff]   ;;  %v638_v13 = vld [vmem:[%s852_s1 + $0x28] sm:$0xff]  }
   0x5   :  { %v645_v11 = vld [vmem:[%s853_s0 + $0x4] ss:$8 sps:$4 sm:$0xff]   ;;  %v639_v14 = vld [vmem:[%s852_s1 + $0x70] sm:$0xff]   ;;  %v641_v16 = vld [vmem:[%s852_s1 + $0x78] sm:$0xff]  }
   0x6   :  { %v648_v12 = vld [vmem:[%s853_s0 + $0x44] ss:$8 sps:$4 sm:$0xff]   ;;  %307 = vmatprep.mubr.bf16.mxu0 %v645_v11  ;;  %v640_v15 = vld [vmem:[%s852_s1 + $0x30] sm:$0xff]   ;;  %v642_v17 = vld [vmem:[%s852_s1 + $0x38] sm:$0xff]  }
   0x7   :  { %550 = vmatpush3.bf16.msra.mxu0 %v630_v3  ;;  %620 = vmatpush3.bf16.msra.mxu1 %v630_v3  ;;  %v643_v18 = vld [vmem:[%s853_s0] ss:$8 sps:$4 sm:$0xff]   ;;  %v649_v20 = vld [vmem:[%s853_s0 + $0x14] ss:$8 sps:$4 sm:$0xff]   ;;  %v653_v22 = vld [vmem:[%s853_s0 + $0x10] ss:$8 sps:$4 sm:$0xff]  }
   0x8   :  { %551 = vmatprep.subr.bf16.mxu0 %v631_v4  ;;  %613 = vmatprep.subr.bf16.mxu1 %v631_v4  ;;  %v646_v19 = vld [vmem:[%s853_s0 + $0x40] ss:$8 sps:$4 sm:$0xff]   ;;  %v651_v21 = vld [vmem:[%s853_s0 + $0x54] ss:$8 sps:$4 sm:$0xff]   ;;  %v654_v23 = vld [vmem:[%s853_s0 + $0x50] ss:$8 sps:$4 sm:$0xff]  }
   0x9   :  { %339 = vmatprep.mubr.bf16.mxu1 %v648_v12  ;;  %v655_v24 = vld [vmem:[%s853_s0 + $0x24] ss:$8 sps:$4 sm:$0xff]   ;;  %v659_v26 = vld [vmem:[%s853_s0 + $0x20] ss:$8 sps:$4 sm:$0xff]   ;;  %v661_v28 = vld [vmem:[%s853_s0 + $0x34] ss:$8 sps:$4 sm:$0xff]  }
   0xa   :  { %v657_v25 = vld [vmem:[%s853_s0 + $0x64] ss:$8 sps:$4 sm:$0xff]   ;;  %v660_v27 = vld [vmem:[%s853_s0 + $0x60] ss:$8 sps:$4 sm:$0xff]   ;;  %v663_v29 = vld [vmem:[%s853_s0 + $0x74] ss:$8 sps:$4 sm:$0xff]  }
   0xb   :  { %552 = vmatpush3.bf16.msra.mxu0 %v632_v5  ;;  %621 = vmatpush3.bf16.msra.mxu1 %v632_v5  ;;  %v665_v30 = vld [vmem:[%s853_s0 + $0x30] ss:$8 sps:$4 sm:$0xff]   ;;  %v786_v35 = vld [vmem:[%s854_s2] ss:$0 sm:$0xff] }
   0xc   :  { %553 = vmatprep.subr.bf16.mxu0 %v633_v6  ;;  %614 = vmatprep.subr.bf16.mxu1 %v633_v6  ;;  %v666_v31 = vld [vmem:[%s853_s0 + $0x70] ss:$8 sps:$4 sm:$0xff]  }
   0xf   :  { %554 = vmatpush3.bf16.msra.mxu0 %v634_v7  ;;  %622 = vmatpush3.bf16.msra.mxu1 %v634_v7 }
  0x10   :  { %555 = vmatprep.subr.bf16.mxu0 %v635_v8  ;;  %615 = vmatprep.subr.bf16.mxu1 %v635_v8 }
  0x13   :  { %556 = vmatpush3.bf16.msra.mxu0 %v636_v9  ;;  %623 = vmatpush3.bf16.msra.mxu1 %v636_v9 }
  0x14   :  { %557 = vmatprep.subr.bf16.mxu0 %v637_v10  ;;  %616 = vmatprep.subr.bf16.mxu1 %v637_v10 }
  0x17   :  { %558 = vmatpush3.bf16.msra.mxu0 %v638_v13  ;;  %624 = vmatpush3.bf16.msra.mxu1 %v638_v13 }
  0x18   :  { %559 = vmatprep.subr.bf16.mxu0 %v639_v14  ;;  %617 = vmatprep.subr.bf16.mxu1 %v639_v14 }
  0x1b   :  { %560 = vmatpush3.bf16.msra.mxu0 %v640_v15  ;;  %625 = vmatpush3.bf16.msra.mxu1 %v640_v15 }
  0x1c   :  { %561 = vmatprep.subr.bf16.mxu0 %v641_v16  ;;  %618 = vmatprep.subr.bf16.mxu1 %v641_v16 }
  0x1f   :  { %562 = vmatpush3.bf16.msra.mxu0 %v642_v17  ;;  %626 = vmatpush3.bf16.msra.mxu1 %v642_v17 }
  0x22   :  { %308 = vmatmul.mubr.bf16.vlgmr.msra.gmra.mrb[0].mxu0 %v643_v18  ;;  %340 = vmatmul.mubr.bf16.vlgmr.msra.gmra.mrb[0].mxu1 %v646_v19 }
  0x23   :  { %315 = vmatprep.mubr.bf16.mxu0 %v649_v20  ;;  %347 = vmatprep.mubr.bf16.mxu1 %v651_v21 }
  0x2a   :  { %316 = vmatmul.mubr.bf16.gmra.mrb[4].mxu0 %v653_v22  ;;  %348 = vmatmul.mubr.bf16.gmra.mrb[4].mxu1 %v654_v23 }
  0x2b   :  { %323 = vmatprep.mubr.bf16.mxu0 %v655_v24  ;;  %355 = vmatprep.mubr.bf16.mxu1 %v657_v25 }
  0x32   :  { %324 = vmatmul.mubr.bf16.gmra.mrb[8].mxu0 %v659_v26  ;;  %356 = vmatmul.mubr.bf16.gmra.mrb[8].mxu1 %v660_v27 }
  0x33   :  { %331 = vmatprep.mubr.bf16.mxu0 %v661_v28  ;;  %363 = vmatprep.mubr.bf16.mxu1 %v663_v29 }
  0x3a   :  { %332 = vmatmul.mubr.bf16.gmra.mrb[12].mxu0 %v665_v30  ;;  %364 = vmatmul.mubr.bf16.gmra.mrb[12].mxu1 %v666_v31 }
  0xf5   :  { %v563_v32 = vpop.f32.mrb[0].mxu0  ;;  %v587_v33 = vpop.f32.mrb[0].mxu1 }
  0xf6   :  { %v564_v34 = vpop.f32.mrb[1].mxu0  ;;  %v588_v36 = vpop.f32.mrb[1].mxu1 }
  0xf7   :  { %v565_v37 = vadd.f32 %v564_v34, %v563_v32  ;;  %v589_v38 = vadd.f32 %v588_v36, %v587_v33  ;;  %v566_v39 = vpop.f32.mrb[2].mxu0  ;;  %v590_v40 = vpop.f32.mrb[2].mxu1 }
  0xf8   :  { %v567_v41 = vpop.f32.mrb[3].mxu0  ;;  %v591_v42 = vpop.f32.mrb[3].mxu1 }
  0xf9   :  { %v430_v43 = vadd.f32 %v565_v37, %v786_v35  ;;  %v438_v44 = vadd.f32 %v589_v38, %v786_v35  ;;  %v568_v45 = vadd.f32 %v567_v41, %v566_v39  ;;  %v592_v46 = vadd.f32 %v591_v42, %v590_v40 }
  0xfb   :  { %vm446_vm0 = vcmp.gt.f32.partialorder %v430_v43, 0.0  ;;  %v462_v47 = vmul.f32 0.1, %v430_v43  ;;  %vm454_vm1 = vcmp.gt.f32.partialorder %v438_v44, 0.0  ;;  %v470_v48 = vmul.f32 0.1, %v438_v44 }
  0xfc   :  { %v431_v49 = vadd.f32 %v568_v45, %v786_v35  ;;  %v439_v50 = vadd.f32 %v592_v46, %v786_v35 }
  0xfd   :  { %v478_v51 = vsel %vm446_vm0, %v430_v43, %v462_v47  ;;  %v486_v52 = vsel %vm454_vm1, %v438_v44, %v470_v48  ;;  %v569_v53 = vpop.f32.mrb[4].mxu0  ;;  %v593_v54 = vpop.f32.mrb[4].mxu1 }
  0xfe   :  { %494 = vst [vmem:[%s855_s3] sm:$0xff] %v478_v51  ;;  %502 = vst [vmem:[%s855_s3 + $0x40] sm:$0xff] %v486_v52  ;;  %vm447_vm2 = vcmp.gt.f32.partialorder %v431_v49, 0.0  ;;  %v463_v55 = vmul.f32 0.1, %v431_v49  ;;  %vm455_vm3 = vcmp.gt.f32.partialorder %v439_v50, 0.0  ;;  %v570_v57 = vpop.f32.mrb[5].mxu0 }
  0xff   :  { %v471_v56 = vmul.f32 0.1, %v439_v50  ;;  %v594_v58 = vpop.f32.mrb[5].mxu1  ;;  %v571_v61 = vadd.f32 %v570_v57, %v569_v53  ;;  %v572_v63 = vpop.f32.mrb[6].mxu0 }
 0x100   :  { %v479_v59 = vsel %vm447_vm2, %v431_v49, %v463_v55  ;;  %v595_v62 = vadd.f32 %v594_v58, %v593_v54  ;;  %v596_v0 = vpop.f32.mrb[6].mxu1  ;;  %v573_v1 = vpop.f32.mrb[7].mxu0 }
 0x101   :  { %v487_v60 = vsel %vm455_vm3, %v439_v50, %v471_v56  ;;  %495 = vst [vmem:[%s855_s3 + $0x8] sm:$0xff] %v479_v59  ;;  %v597_v2 = vpop.f32.mrb[7].mxu1  ;;  %v432_v3 = vadd.f32 %v571_v61, %v786_v35  ;;  %v574_v5 = vadd.f32 %v573_v1, %v572_v63 }
 0x102   :  { %503 = vst [vmem:[%s855_s3 + $0x48] sm:$0xff] %v487_v60  ;;  %v440_v4 = vadd.f32 %v595_v62, %v786_v35  ;;  %v598_v6 = vadd.f32 %v597_v2, %v596_v0 }
 0x103   :  { %vm448_vm4 = vcmp.gt.f32.partialorder %v432_v3, 0.0  ;;  %v464_v7 = vmul.f32 0.1, %v432_v3  ;;  %v433_v9 = vadd.f32 %v574_v5, %v786_v35 }
 0x104   :  { %vm456_vm5 = vcmp.gt.f32.partialorder %v440_v4, 0.0  ;;  %v472_v8 = vmul.f32 0.1, %v440_v4  ;;  %v441_v10 = vadd.f32 %v598_v6, %v786_v35 }
 0x105   :  { %v575_v11 = vpop.f32.mrb[8].mxu0  ;;  %v599_v12 = vpop.f32.mrb[8].mxu1  ;;  %v480_v13 = vsel %vm448_vm4, %v432_v3, %v464_v7  ;;  %vm449_vm6 = vcmp.gt.f32.partialorder %v433_v9, 0.0  ;;  %v465_v17 = vmul.f32 0.1, %v433_v9 }
 0x106   :  { %v488_v14 = vsel %vm456_vm5, %v440_v4, %v472_v8  ;;  %v576_v15 = vpop.f32.mrb[9].mxu0  ;;  %v600_v16 = vpop.f32.mrb[9].mxu1  ;;  %496 = vst [vmem:[%s855_s3 + $0x10] sm:$0xff] %v480_v13  ;;  %vm457_vm7 = vcmp.gt.f32.partialorder %v441_v10, 0.0  ;;  %v473_v18 = vmul.f32 0.1, %v441_v10 }
 0x107   :  { %504 = vst [vmem:[%s855_s3 + $0x50] sm:$0xff] %v488_v14  ;;  %v577_v19 = vadd.f32 %v576_v15, %v575_v11  ;;  %v601_v20 = vadd.f32 %v600_v16, %v599_v12  ;;  %v578_v21 = vpop.f32.mrb[10].mxu0  ;;  %v602_v22 = vpop.f32.mrb[10].mxu1  ;;  %v481_v23 = vsel %vm449_vm6, %v433_v9, %v465_v17 }
 0x108   :  { %v489_v24 = vsel %vm457_vm7, %v441_v10, %v473_v18  ;;  %v579_v25 = vpop.f32.mrb[11].mxu0  ;;  %v603_v26 = vpop.f32.mrb[11].mxu1  ;;  %497 = vst [vmem:[%s855_s3 + $0x18] sm:$0xff] %v481_v23 }
 0x109   :  { %505 = vst [vmem:[%s855_s3 + $0x58] sm:$0xff] %v489_v24  ;;  %v434_v27 = vadd.f32 %v577_v19, %v786_v35  ;;  %v442_v28 = vadd.f32 %v601_v20, %v786_v35  ;;  %v580_v29 = vadd.f32 %v579_v25, %v578_v21  ;;  %v604_v30 = vadd.f32 %v603_v26, %v602_v22 }
 0x10b   :  { %vm450_vm8 = vcmp.gt.f32.partialorder %v434_v27, 0.0  ;;  %v466_v31 = vmul.f32 0.1, %v434_v27  ;;  %vm458_vm9 = vcmp.gt.f32.partialorder %v442_v28, 0.0  ;;  %v474_v32 = vmul.f32 0.1, %v442_v28 }
 0x10c   :  { %v435_v33 = vadd.f32 %v580_v29, %v786_v35  ;;  %v443_v34 = vadd.f32 %v604_v30, %v786_v35 }
 0x10d   :  { %v581_v36 = vpop.f32.mrb[12].mxu0  ;;  %v605_v37 = vpop.f32.mrb[12].mxu1  ;;  %v482_v38 = vsel %vm450_vm8, %v434_v27, %v466_v31  ;;  %v490_v39 = vsel %vm458_vm9, %v442_v28, %v474_v32 }
 0x10e   :  { %v582_v40 = vpop.f32.mrb[13].mxu0  ;;  %v606_v41 = vpop.f32.mrb[13].mxu1  ;;  %498 = vst [vmem:[%s855_s3 + $0x20] sm:$0xff] %v482_v38  ;;  %506 = vst [vmem:[%s855_s3 + $0x60] sm:$0xff] %v490_v39  ;;  %vm451_vm10 = vcmp.gt.f32.partialorder %v435_v33, 0.0  ;;  %vm459_vm11 = vcmp.gt.f32.partialorder %v443_v34, 0.0 }
 0x10f   :  { %v467_v42 = vmul.f32 0.1, %v435_v33  ;;  %v475_v43 = vmul.f32 0.1, %v443_v34  ;;  %v583_v44 = vadd.f32 %v582_v40, %v581_v36  ;;  %v607_v45 = vadd.f32 %v606_v41, %v605_v37  ;;  %v584_v46 = vpop.f32.mrb[14].mxu0  ;;  %v608_v47 = vpop.f32.mrb[14].mxu1 }
 0x110   :  { %v585_v50 = vpop.f32.mrb[15].mxu0  ;;  %v609_v51 = vpop.f32.mrb[15].mxu1 }
 0x111   :  { %v483_v48 = vsel %vm451_vm10, %v435_v33, %v467_v42  ;;  %v491_v49 = vsel %vm459_vm11, %v443_v34, %v475_v43  ;;  %v436_v52 = vadd.f32 %v583_v44, %v786_v35  ;;  %v444_v53 = vadd.f32 %v607_v45, %v786_v35 }
 0x112   :  { %499 = vst [vmem:[%s855_s3 + $0x28] sm:$0xff] %v483_v48  ;;  %507 = vst [vmem:[%s855_s3 + $0x68] sm:$0xff] %v491_v49  ;;  %v586_v54 = vadd.f32 %v585_v50, %v584_v46  ;;  %v610_v55 = vadd.f32 %v609_v51, %v608_v47 }
 0x113   :  { %vm452_vm12 = vcmp.gt.f32.partialorder %v436_v52, 0.0  ;;  %v468_v56 = vmul.f32 0.1, %v436_v52  ;;  %vm460_vm13 = vcmp.gt.f32.partialorder %v444_v53, 0.0  ;;  %v476_v57 = vmul.f32 0.1, %v444_v53 }
 0x114   :  { %v437_v58 = vadd.f32 %v586_v54, %v786_v35  ;;  %v445_v59 = vadd.f32 %v610_v55, %v786_v35 }
 0x115   :  { %v484_v60 = vsel %vm452_vm12, %v436_v52, %v468_v56  ;;  %v492_v61 = vsel %vm460_vm13, %v444_v53, %v476_v57 }
 0x116   :  { %500 = vst [vmem:[%s855_s3 + $0x30] sm:$0xff] %v484_v60  ;;  %508 = vst [vmem:[%s855_s3 + $0x70] sm:$0xff] %v492_v61  ;;  %vm453_vm14 = vcmp.gt.f32.partialorder %v437_v58, 0.0  ;;  %v469_v62 = vmul.f32 0.1, %v437_v58  ;;  %vm461_vm15 = vcmp.gt.f32.partialorder %v445_v59, 0.0 }
 0x117   :  { %v477_v63 = vmul.f32 0.1, %v445_v59 }
 0x118   :  { %v485_v0 = vsel %vm453_vm14, %v437_v58, %v469_v62 }
 0x119   :  { %v493_v1 = vsel %vm461_vm15, %v445_v59, %v477_v63  ;;  %501 = vst [vmem:[%s855_s3 + $0x38] sm:$0xff] %v485_v0 }
 0x11a   :  { %509 = vst [vmem:[%s855_s3 + $0x78] sm:$0xff] %v493_v1 }

// kernel: _lambda_.2
= control target key start
LH: loop header
LB: loop body
LE: loop exit
PB: predicated region body
PF: predicated region fallthrough
CT: control target
= control target key end

     0   :  { %s1521_s12 = smov 0   ;;  %s1523_s13 = smov 0   ;;  %s1714_s0 = inlined_call_operand.vmem [shape: bf16[512,256], index: 0, kind: input, shape index: {}]   ;;  %s1715_s1 = inlined_call_operand.vmem [shape: bf16[256,128], index: 1, kind: input, shape index: {}]   ;;  %s1716_s2 = inlined_call_operand.vmem [shape: f32[1,128], index: 2, kind: input, shape index: {}]   ;;  %s1717_s3 = inlined_call_operand.vmem [shape: f32[512,128], index: 3, kind: output, shape index: {}]  }
   0x1   :  { %s1525_s14 = smov 0  }
   0x2 LB: > { %s32_s15 = sadd.s32 1, %s1495_s13  ;;  %p1203_p0 = scmp.ge.s32.totalorder %s1499_s14, 1  ;;  %s1499_s14 = sphi %s1525_s14, %s13_s14   ;;  %s1495_s13 = sphi %s1523_s13, %s1719_s13   ;;  %s1491_s12 = sphi %s1521_s12, %s1718_s12  }
   0x3   : > { %p34_p1 = scmp.ge.s32.totalorder %s32_s15, 2  ;;  %p191_p2 = scmp.lt.s32.totalorder %s1499_s14, 3 }
   0x5   : > { %s1721_s15 = smov (%p34_p1, %s32_s15), 0  ;;  %p192_p3 = pnand %p1203_p0, %p191_p2 }
   0x6   : > { %v1413_v0 = vld [vmem:[%s1715_s1 + $0x40] sm:$0xff] (!%p192_p3)   ;;  %s1204_s18 = sshll.u32 (!%p192_p3), %s1491_s12, 5  ;;  %v1415_v2 = vld [vmem:[%s1715_s1 + $0x48] sm:$0xff] (!%p192_p3)   ;;  %v1417_v4 = vld [vmem:[%s1715_s1 + $0x50] sm:$0xff] (!%p192_p3)  }
   0x7   : > { %195 = sbr.rel (%p192_p3) target bundleno = 320 (0x140), region = 32  ;;  %v1414_v1 = vld [vmem:[%s1715_s1] sm:$0xff] (!%p192_p3)   ;;  %1261 = vmatprep.subr.bf16.mxu0 (!%p192_p3), %v1413_v0  ;;  %1373 = vmatprep.subr.bf16.mxu1 (!%p192_p3), %v1413_v0  ;;  %v1416_v3 = vld [vmem:[%s1715_s1 + $0x8] sm:$0xff] (!%p192_p3)   ;;  %p236_p4 = scmp.lt.s32.totalorder (!%p192_p3), %s1204_s18, 63  ;;  %v1418_v5 = vld [vmem:[%s1715_s1 + $0x10] sm:$0xff] (!%p192_p3)  }
   0x8   : > { %1262 = vmatpush3.bf16.msra.mxu0 (!%p192_p3), %v1414_v1  ;;  %1381 = vmatpush3.bf16.msra.mxu1 (!%p192_p3), %v1414_v1  ;;  %v1419_v6 = vld [vmem:[%s1715_s1 + $0x58] sm:$0xff] (!%p192_p3)   ;;  %v1421_v8 = vld [vmem:[%s1715_s1 + $0x60] sm:$0xff] (!%p192_p3)   ;;  %v1423_v10 = vld [vmem:[%s1715_s1 + $0x68] sm:$0xff] (!%p192_p3)  }
   0x9   : > { %1263 = vmatprep.subr.bf16.mxu0 (!%p192_p3), %v1415_v2  ;;  %1374 = vmatprep.subr.bf16.mxu1 (!%p192_p3), %v1415_v2  ;;  %v1420_v7 = vld [vmem:[%s1715_s1 + $0x18] sm:$0xff] (!%p192_p3)   ;;  %v1422_v9 = vld [vmem:[%s1715_s1 + $0x20] sm:$0xff] (!%p192_p3)   ;;  %v1424_v13 = vld [vmem:[%s1715_s1 + $0x28] sm:$0xff] (!%p192_p3)  }
   0xa   : > { %v1425_v14 = vld [vmem:[%s1715_s1 + $0x70] sm:$0xff] (!%p192_p3)   ;;  %v1427_v16 = vld [vmem:[%s1715_s1 + $0x78] sm:$0xff] (!%p192_p3)   ;;  %v1632_v51 = vld [vmem:[%s1716_s2] ss:$0 sm:$0xff] (!%p192_p3) }
   0xb   : > { %v1426_v15 = vld [vmem:[%s1715_s1 + $0x30] sm:$0xff] (!%p192_p3)   ;;  %v1428_v17 = vld [vmem:[%s1715_s1 + $0x38] sm:$0xff] (!%p192_p3)  }
   0xc   : > { %1264 = vmatpush3.bf16.msra.mxu0 (!%p192_p3), %v1416_v3  ;;  %1382 = vmatpush3.bf16.msra.mxu1 (!%p192_p3), %v1416_v3 }
   0xd   : > { %1265 = vmatprep.subr.bf16.mxu0 (!%p192_p3), %v1417_v4  ;;  %1375 = vmatprep.subr.bf16.mxu1 (!%p192_p3), %v1417_v4 }
   0xe   : > { %s1723_s18 = smov (!%p236_p4, %s1204_s18), 63 }
   0xf   : > { %s1260_s6 = sshll.u32 %s1723_s18, 3 }
  0x10   : > { %1266 = vmatpush3.bf16.msra.mxu0 %v1418_v5  ;;  %1383 = vmatpush3.bf16.msra.mxu1 %v1418_v5  ;;  %s1574_s11 = scalar_lea.vmem %s1714_s0, %s1260_s6  ;;  %s1641_s8 = scalar_lea.vmem %s1717_s3, %s1260_s6 }
  0x11   : > { %1267 = vmatprep.subr.bf16.mxu0 %v1419_v6  ;;  %1376 = vmatprep.subr.bf16.mxu1 %v1419_v6  ;;  %v1431_v11 = vld [vmem:[%s1574_s11 + $0x4] ss:$8 sps:$4 sm:$0xff]   ;;  %v1429_v18 = vld [vmem:[%s1574_s11] ss:$8 sps:$4 sm:$0xff]   ;;  %v1435_v20 = vld [vmem:[%s1574_s11 + $0x14] ss:$8 sps:$4 sm:$0xff]  }
  0x12   : > { %v1434_v12 = vld [vmem:[%s1574_s11 + $0x84] ss:$8 sps:$4 sm:$0xff]   ;;  %688 = vmatprep.mubr.bf16.mxu0 %v1431_v11  ;;  %v1432_v19 = vld [vmem:[%s1574_s11 + $0x80] ss:$8 sps:$4 sm:$0xff]   ;;  %v1437_v21 = vld [vmem:[%s1574_s11 + $0x94] ss:$8 sps:$4 sm:$0xff]  }
  0x13   : > { %752 = vmatprep.mubr.bf16.mxu1 %v1434_v12  ;;  %v1439_v22 = vld [vmem:[%s1574_s11 + $0x10] ss:$8 sps:$4 sm:$0xff]   ;;  %v1441_v24 = vld [vmem:[%s1574_s11 + $0x24] ss:$8 sps:$4 sm:$0xff]   ;;  %v1445_v26 = vld [vmem:[%s1574_s11 + $0x20] ss:$8 sps:$4 sm:$0xff]  }
  0x14   : > { %1268 = vmatpush3.bf16.msra.mxu0 %v1420_v7  ;;  %1384 = vmatpush3.bf16.msra.mxu1 %v1420_v7  ;;  %v1440_v23 = vld [vmem:[%s1574_s11 + $0x90] ss:$8 sps:$4 sm:$0xff]   ;;  %v1443_v25 = vld [vmem:[%s1574_s11 + $0xa4] ss:$8 sps:$4 sm:$0xff]   ;;  %v1446_v27 = vld [vmem:[%s1574_s11 + $0xa0] ss:$8 sps:$4 sm:$0xff]  }
  0x15   : > { %1269 = vmatprep.subr.bf16.mxu0 %v1421_v8  ;;  %1377 = vmatprep.subr.bf16.mxu1 %v1421_v8  ;;  %v1447_v28 = vld [vmem:[%s1574_s11 + $0x34] ss:$8 sps:$4 sm:$0xff]   ;;  %v1451_v30 = vld [vmem:[%s1574_s11 + $0x30] ss:$8 sps:$4 sm:$0xff]   ;;  %v1453_v32 = vld [vmem:[%s1574_s11 + $0x44] ss:$8 sps:$4 sm:$0xff]  }
  0x16   : > { %v1449_v29 = vld [vmem:[%s1574_s11 + $0xb4] ss:$8 sps:$4 sm:$0xff]   ;;  %v1452_v31 = vld [vmem:[%s1574_s11 + $0xb0] ss:$8 sps:$4 sm:$0xff]   ;;  %v1455_v33 = vld [vmem:[%s1574_s11 + $0xc4] ss:$8 sps:$4 sm:$0xff]  }
  0x17   : > { %v1457_v34 = vld [vmem:[%s1574_s11 + $0x40] ss:$8 sps:$4 sm:$0xff]   ;;  %v1459_v36 = vld [vmem:[%s1574_s11 + $0x54] ss:$8 sps:$4 sm:$0xff]   ;;  %v1463_v38 = vld [vmem:[%s1574_s11 + $0x50] ss:$8 sps:$4 sm:$0xff]  }
  0x18   : > { %1270 = vmatpush3.bf16.msra.mxu0 %v1422_v9  ;;  %1385 = vmatpush3.bf16.msra.mxu1 %v1422_v9  ;;  %v1458_v35 = vld [vmem:[%s1574_s11 + $0xc0] ss:$8 sps:$4 sm:$0xff]   ;;  %v1461_v37 = vld [vmem:[%s1574_s11 + $0xd4] ss:$8 sps:$4 sm:$0xff]   ;;  %v1464_v39 = vld [vmem:[%s1574_s11 + $0xd0] ss:$8 sps:$4 sm:$0xff]  }
  0x19   : > { %1271 = vmatprep.subr.bf16.mxu0 %v1423_v10  ;;  %1378 = vmatprep.subr.bf16.mxu1 %v1423_v10  ;;  %v1465_v40 = vld [vmem:[%s1574_s11 + $0x64] ss:$8 sps:$4 sm:$0xff]   ;;  %v1469_v42 = vld [vmem:[%s1574_s11 + $0x60] ss:$8 sps:$4 sm:$0xff]   ;;  %v1471_v44 = vld [vmem:[%s1574_s11 + $0x74] ss:$8 sps:$4 sm:$0xff]  }
  0x1a   : > { %v1467_v41 = vld [vmem:[%s1574_s11 + $0xe4] ss:$8 sps:$4 sm:$0xff]   ;;  %v1470_v43 = vld [vmem:[%s1574_s11 + $0xe0] ss:$8 sps:$4 sm:$0xff]   ;;  %v1473_v45 = vld [vmem:[%s1574_s11 + $0xf4] ss:$8 sps:$4 sm:$0xff]  }
  0x1b   : > { %v1475_v46 = vld [vmem:[%s1574_s11 + $0x70] ss:$8 sps:$4 sm:$0xff]  }
  0x1c   : > { %1272 = vmatpush3.bf16.msra.mxu0 %v1424_v13  ;;  %1386 = vmatpush3.bf16.msra.mxu1 %v1424_v13  ;;  %v1476_v47 = vld [vmem:[%s1574_s11 + $0xf0] ss:$8 sps:$4 sm:$0xff]  }
  0x1d   : > { %1273 = vmatprep.subr.bf16.mxu0 %v1425_v14  ;;  %1379 = vmatprep.subr.bf16.mxu1 %v1425_v14 }
  0x20   : > { %1274 = vmatpush3.bf16.msra.mxu0 %v1426_v15  ;;  %1387 = vmatpush3.bf16.msra.mxu1 %v1426_v15 }
  0x21   : > { %1275 = vmatprep.subr.bf16.mxu0 %v1427_v16  ;;  %1380 = vmatprep.subr.bf16.mxu1 %v1427_v16 }
  0x24   : > { %1276 = vmatpush3.bf16.msra.mxu0 %v1428_v17  ;;  %1388 = vmatpush3.bf16.msra.mxu1 %v1428_v17 }
  0x27   : > { %689 = vmatmul.mubr.bf16.vlgmr.msra.gmra.mrb[0].mxu0 %v1429_v18  ;;  %753 = vmatmul.mubr.bf16.vlgmr.msra.gmra.mrb[0].mxu1 %v1432_v19 }
  0x28   : > { %696 = vmatprep.mubr.bf16.mxu0 %v1435_v20  ;;  %760 = vmatprep.mubr.bf16.mxu1 %v1437_v21 }
  0x2f   : > { %697 = vmatmul.mubr.bf16.gmra.mrb[4].mxu0 %v1439_v22  ;;  %761 = vmatmul.mubr.bf16.gmra.mrb[4].mxu1 %v1440_v23 }
  0x30   : > { %704 = vmatprep.mubr.bf16.mxu0 %v1441_v24  ;;  %768 = vmatprep.mubr.bf16.mxu1 %v1443_v25 }
  0x37   : > { %705 = vmatmul.mubr.bf16.gmra.mrb[8].mxu0 %v1445_v26  ;;  %769 = vmatmul.mubr.bf16.gmra.mrb[8].mxu1 %v1446_v27 }
  0x38   : > { %712 = vmatprep.mubr.bf16.mxu0 %v1447_v28  ;;  %776 = vmatprep.mubr.bf16.mxu1 %v1449_v29 }
  0x3f   : > { %713 = vmatmul.mubr.bf16.gmra.mrb[12].mxu0 %v1451_v30  ;;  %777 = vmatmul.mubr.bf16.gmra.mrb[12].mxu1 %v1452_v31 }
  0x40   : > { %720 = vmatprep.mubr.bf16.mxu0 %v1453_v32  ;;  %784 = vmatprep.mubr.bf16.mxu1 %v1455_v33 }
  0x47   : > { %721 = vmatmul.mubr.bf16.gmra.mrb[16].mxu0 %v1457_v34  ;;  %785 = vmatmul.mubr.bf16.gmra.mrb[16].mxu1 %v1458_v35 }
  0x48   : > { %728 = vmatprep.mubr.bf16.mxu0 %v1459_v36  ;;  %792 = vmatprep.mubr.bf16.mxu1 %v1461_v37 }
  0x4f   : > { %729 = vmatmul.mubr.bf16.gmra.mrb[20].mxu0 %v1463_v38  ;;  %793 = vmatmul.mubr.bf16.gmra.mrb[20].mxu1 %v1464_v39 }
  0x50   : > { %736 = vmatprep.mubr.bf16.mxu0 %v1465_v40  ;;  %800 = vmatprep.mubr.bf16.mxu1 %v1467_v41 }
  0x57   : > { %737 = vmatmul.mubr.bf16.gmra.mrb[24].mxu0 %v1469_v42  ;;  %801 = vmatmul.mubr.bf16.gmra.mrb[24].mxu1 %v1470_v43 }
  0x58   : > { %744 = vmatprep.mubr.bf16.mxu0 %v1471_v44  ;;  %808 = vmatprep.mubr.bf16.mxu1 %v1473_v45 }
  0x5f   : > { %745 = vmatmul.mubr.bf16.gmra.mrb[28].mxu0 %v1475_v46  ;;  %809 = vmatmul.mubr.bf16.gmra.mrb[28].mxu1 %v1476_v47 }
  0xfa   : > { %v1277_v48 = vpop.f32.mrb[0].mxu0  ;;  %v1325_v49 = vpop.f32.mrb[0].mxu1 }
  0xfb   : > { %v1278_v50 = vpop.f32.mrb[1].mxu0  ;;  %v1326_v52 = vpop.f32.mrb[1].mxu1 }
  0xfc   : > { %v1279_v53 = vadd.f32 %v1278_v50, %v1277_v48  ;;  %v1327_v54 = vadd.f32 %v1326_v52, %v1325_v49  ;;  %v1280_v55 = vpop.f32.mrb[2].mxu0  ;;  %v1328_v56 = vpop.f32.mrb[2].mxu1 }
  0xfd   : > { %v1281_v57 = vpop.f32.mrb[3].mxu0  ;;  %v1329_v58 = vpop.f32.mrb[3].mxu1 }
  0xfe   : > { %v923_v59 = vadd.f32 %v1279_v53, %v1632_v51  ;;  %v939_v60 = vadd.f32 %v1327_v54, %v1632_v51  ;;  %v1282_v61 = vadd.f32 %v1281_v57, %v1280_v55  ;;  %v1330_v62 = vadd.f32 %v1329_v58, %v1328_v56 }
 0x100   : > { %vm955_vm0 = vcmp.gt.f32.partialorder %v923_v59, 0.0  ;;  %v987_v63 = vmul.f32 0.1, %v923_v59  ;;  %vm971_vm1 = vcmp.gt.f32.partialorder %v939_v60, 0.0  ;;  %v1003_v0 = vmul.f32 0.1, %v939_v60 }
 0x101   : > { %v924_v1 = vadd.f32 %v1282_v61, %v1632_v51  ;;  %v940_v2 = vadd.f32 %v1330_v62, %v1632_v51 }
 0x102   : > { %v1019_v3 = vsel %vm955_vm0, %v923_v59, %v987_v63  ;;  %v1035_v4 = vsel %vm971_vm1, %v939_v60, %v1003_v0  ;;  %v1283_v5 = vpop.f32.mrb[4].mxu0  ;;  %v1331_v6 = vpop.f32.mrb[4].mxu1 }
 0x103   : > { %1051 = vst [vmem:[%s1641_s8] sm:$0xff] %v1019_v3  ;;  %1067 = vst [vmem:[%s1641_s8 + $0x80] sm:$0xff] %v1035_v4  ;;  %vm956_vm2 = vcmp.gt.f32.partialorder %v924_v1, 0.0  ;;  %v988_v7 = vmul.f32 0.1, %v924_v1  ;;  %vm972_vm3 = vcmp.gt.f32.partialorder %v940_v2, 0.0  ;;  %v1284_v9 = vpop.f32.mrb[5].mxu0 }
 0x104   : > { %v1004_v8 = vmul.f32 0.1, %v940_v2  ;;  %v1332_v10 = vpop.f32.mrb[5].mxu1  ;;  %v1285_v13 = vadd.f32 %v1284_v9, %v1283_v5  ;;  %v1286_v15 = vpop.f32.mrb[6].mxu0 }
 0x105   : > { %v1020_v11 = vsel %vm956_vm2, %v924_v1, %v988_v7  ;;  %v1333_v14 = vadd.f32 %v1332_v10, %v1331_v6  ;;  %v1334_v16 = vpop.f32.mrb[6].mxu1  ;;  %v1287_v17 = vpop.f32.mrb[7].mxu0 }
 0x106   : > { %v1036_v12 = vsel %vm972_vm3, %v940_v2, %v1004_v8  ;;  %1052 = vst [vmem:[%s1641_s8 + $0x8] sm:$0xff] %v1020_v11  ;;  %v1335_v18 = vpop.f32.mrb[7].mxu1  ;;  %v925_v19 = vadd.f32 %v1285_v13, %v1632_v51  ;;  %v1288_v21 = vadd.f32 %v1287_v17, %v1286_v15 }
 0x107   : > { %1068 = vst [vmem:[%s1641_s8 + $0x88] sm:$0xff] %v1036_v12  ;;  %v941_v20 = vadd.f32 %v1333_v14, %v1632_v51  ;;  %v1336_v22 = vadd.f32 %v1335_v18, %v1334_v16 }
 0x108   : > { %vm957_vm4 = vcmp.gt.f32.partialorder %v925_v19, 0.0  ;;  %v989_v23 = vmul.f32 0.1, %v925_v19  ;;  %v926_v25 = vadd.f32 %v1288_v21, %v1632_v51 }
 0x109   : > { %vm973_vm5 = vcmp.gt.f32.partialorder %v941_v20, 0.0  ;;  %v1005_v24 = vmul.f32 0.1, %v941_v20  ;;  %v942_v26 = vadd.f32 %v1336_v22, %v1632_v51 }
 0x10a   : > { %v1289_v27 = vpop.f32.mrb[8].mxu0  ;;  %v1337_v28 = vpop.f32.mrb[8].mxu1  ;;  %v1021_v29 = vsel %vm957_vm4, %v925_v19, %v989_v23  ;;  %vm958_vm6 = vcmp.gt.f32.partialorder %v926_v25, 0.0  ;;  %v990_v33 = vmul.f32 0.1, %v926_v25 }
 0x10b   : > { %v1037_v30 = vsel %vm973_vm5, %v941_v20, %v1005_v24  ;;  %v1290_v31 = vpop.f32.mrb[9].mxu0  ;;  %v1338_v32 = vpop.f32.mrb[9].mxu1  ;;  %1053 = vst [vmem:[%s1641_s8 + $0x10] sm:$0xff] %v1021_v29  ;;  %vm974_vm7 = vcmp.gt.f32.partialorder %v942_v26, 0.0  ;;  %v1006_v34 = vmul.f32 0.1, %v942_v26 }
 0x10c   : > { %1069 = vst [vmem:[%s1641_s8 + $0x90] sm:$0xff] %v1037_v30  ;;  %v1291_v35 = vadd.f32 %v1290_v31, %v1289_v27  ;;  %v1339_v36 = vadd.f32 %v1338_v32, %v1337_v28  ;;  %v1292_v37 = vpop.f32.mrb[10].mxu0  ;;  %v1340_v38 = vpop.f32.mrb[10].mxu1  ;;  %v1022_v39 = vsel %vm958_vm6, %v926_v25, %v990_v33 }
 0x10d   : > { %v1038_v40 = vsel %vm974_vm7, %v942_v26, %v1006_v34  ;;  %v1293_v41 = vpop.f32.mrb[11].mxu0  ;;  %v1341_v42 = vpop.f32.mrb[11].mxu1  ;;  %1054 = vst [vmem:[%s1641_s8 + $0x18] sm:$0xff] %v1022_v39 }
 0x10e   : > { %1070 = vst [vmem:[%s1641_s8 + $0x98] sm:$0xff] %v1038_v40  ;;  %v927_v43 = vadd.f32 %v1291_v35, %v1632_v51  ;;  %v943_v44 = vadd.f32 %v1339_v36, %v1632_v51  ;;  %v1294_v45 = vadd.f32 %v1293_v41, %v1292_v37  ;;  %v1342_v46 = vadd.f32 %v1341_v42, %v1340_v38 }
 0x110   : > { %vm959_vm8 = vcmp.gt.f32.partialorder %v927_v43, 0.0  ;;  %v991_v47 = vmul.f32 0.1, %v927_v43  ;;  %vm975_vm9 = vcmp.gt.f32.partialorder %v943_v44, 0.0  ;;  %v1007_v48 = vmul.f32 0.1, %v943_v44 }
 0x111   : > { %v928_v49 = vadd.f32 %v1294_v45, %v1632_v51  ;;  %v944_v50 = vadd.f32 %v1342_v46, %v1632_v51 }
 0x112   : > { %v1295_v52 = vpop.f32.mrb[12].mxu0  ;;  %v1343_v53 = vpop.f32.mrb[12].mxu1  ;;  %v1023_v54 = vsel %vm959_vm8, %v927_v43, %v991_v47  ;;  %v1039_v55 = vsel %vm975_vm9, %v943_v44, %v1007_v48 }
 0x113   : > { %v1296_v56 = vpop.f32.mrb[13].mxu0  ;;  %v1344_v57 = vpop.f32.mrb[13].mxu1  ;;  %1055 = vst [vmem:[%s1641_s8 + $0x20] sm:$0xff] %v1023_v54  ;;  %1071 = vst [vmem:[%s1641_s8 + $0xa0] sm:$0xff] %v1039_v55  ;;  %vm960_vm10 = vcmp.gt.f32.partialorder %v928_v49, 0.0  ;;  %vm976_vm11 = vcmp.gt.f32.partialorder %v944_v50, 0.0 }
 0x114   : > { %v992_v58 = vmul.f32 0.1, %v928_v49  ;;  %v1008_v59 = vmul.f32 0.1, %v944_v50  ;;  %v1297_v60 = vadd.f32 %v1296_v56, %v1295_v52  ;;  %v1345_v61 = vadd.f32 %v1344_v57, %v1343_v53  ;;  %v1298_v62 = vpop.f32.mrb[14].mxu0  ;;  %v1346_v63 = vpop.f32.mrb[14].mxu1 }
 0x115   : > { %v1299_v2 = vpop.f32.mrb[15].mxu0  ;;  %v1347_v3 = vpop.f32.mrb[15].mxu1 }
 0x116   : > { %v1024_v0 = vsel %vm960_vm10, %v928_v49, %v992_v58  ;;  %v1040_v1 = vsel %vm976_vm11, %v944_v50, %v1008_v59  ;;  %v929_v4 = vadd.f32 %v1297_v60, %v1632_v51  ;;  %v945_v5 = vadd.f32 %v1345_v61, %v1632_v51 }
 0x117   : > { %1056 = vst [vmem:[%s1641_s8 + $0x28] sm:$0xff] %v1024_v0  ;;  %1072 = vst [vmem:[%s1641_s8 + $0xa8] sm:$0xff] %v1040_v1  ;;  %v1300_v6 = vadd.f32 %v1299_v2, %v1298_v62  ;;  %v1348_v7 = vadd.f32 %v1347_v3, %v1346_v63 }
 0x118   : > { %vm961_vm12 = vcmp.gt.f32.partialorder %v929_v4, 0.0  ;;  %v993_v8 = vmul.f32 0.1, %v929_v4  ;;  %vm977_vm13 = vcmp.gt.f32.partialorder %v945_v5, 0.0  ;;  %v1009_v9 = vmul.f32 0.1, %v945_v5 }
 0x119   : > { %v930_v10 = vadd.f32 %v1300_v6, %v1632_v51  ;;  %v946_v11 = vadd.f32 %v1348_v7, %v1632_v51 }
 0x11a   : > { %v1301_v12 = vpop.f32.mrb[16].mxu0  ;;  %v1349_v13 = vpop.f32.mrb[16].mxu1  ;;  %v1025_v14 = vsel %vm961_vm12, %v929_v4, %v993_v8  ;;  %v1041_v15 = vsel %vm977_vm13, %v945_v5, %v1009_v9 }
 0x11b   : > { %v1302_v16 = vpop.f32.mrb[17].mxu0  ;;  %v1350_v17 = vpop.f32.mrb[17].mxu1  ;;  %1057 = vst [vmem:[%s1641_s8 + $0x30] sm:$0xff] %v1025_v14  ;;  %1073 = vst [vmem:[%s1641_s8 + $0xb0] sm:$0xff] %v1041_v15  ;;  %vm962_vm14 = vcmp.gt.f32.partialorder %v930_v10, 0.0  ;;  %vm978_vm15 = vcmp.gt.f32.partialorder %v946_v11, 0.0 }
 0x11c   : > { %v994_v18 = vmul.f32 0.1, %v930_v10  ;;  %v1010_v19 = vmul.f32 0.1, %v946_v11  ;;  %v1303_v20 = vadd.f32 %v1302_v16, %v1301_v12  ;;  %v1351_v21 = vadd.f32 %v1350_v17, %v1349_v13  ;;  %v1304_v22 = vpop.f32.mrb[18].mxu0  ;;  %v1352_v23 = vpop.f32.mrb[18].mxu1 }
 0x11d   : > { %v1305_v26 = vpop.f32.mrb[19].mxu0  ;;  %v1353_v27 = vpop.f32.mrb[19].mxu1 }
 0x11e   : > { %v1026_v24 = vsel %vm962_vm14, %v930_v10, %v994_v18  ;;  %v1042_v25 = vsel %vm978_vm15, %v946_v11, %v1010_v19  ;;  %v931_v28 = vadd.f32 %v1303_v20, %v1632_v51  ;;  %v947_v29 = vadd.f32 %v1351_v21, %v1632_v51 }
 0x11f   : > { %1058 = vst [vmem:[%s1641_s8 + $0x38] sm:$0xff] %v1026_v24  ;;  %1074 = vst [vmem:[%s1641_s8 + $0xb8] sm:$0xff] %v1042_v25  ;;  %v1306_v30 = vadd.f32 %v1305_v26, %v1304_v22  ;;  %v1354_v31 = vadd.f32 %v1353_v27, %v1352_v23 }
 0x120   : > { %vm963_vm0 = vcmp.gt.f32.partialorder %v931_v28, 0.0  ;;  %v995_v32 = vmul.f32 0.1, %v931_v28  ;;  %vm979_vm1 = vcmp.gt.f32.partialorder %v947_v29, 0.0  ;;  %v1011_v33 = vmul.f32 0.1, %v947_v29 }
 0x121   : > { %v932_v34 = vadd.f32 %v1306_v30, %v1632_v51  ;;  %v948_v35 = vadd.f32 %v1354_v31, %v1632_v51 }
 0x122   : > { %v1307_v36 = vpop.f32.mrb[20].mxu0  ;;  %v1355_v37 = vpop.f32.mrb[20].mxu1  ;;  %v1027_v38 = vsel %vm963_vm0, %v931_v28, %v995_v32  ;;  %v1043_v39 = vsel %vm979_vm1, %v947_v29, %v1011_v33 }
 0x123   : > { %v1308_v40 = vpop.f32.mrb[21].mxu0  ;;  %v1356_v41 = vpop.f32.mrb[21].mxu1  ;;  %1059 = vst [vmem:[%s1641_s8 + $0x40] sm:$0xff] %v1027_v38  ;;  %1075 = vst [vmem:[%s1641_s8 + $0xc0] sm:$0xff] %v1043_v39  ;;  %vm964_vm2 = vcmp.gt.f32.partialorder %v932_v34, 0.0  ;;  %vm980_vm3 = vcmp.gt.f32.partialorder %v948_v35, 0.0 }
 0x124   : > { %v996_v42 = vmul.f32 0.1, %v932_v34  ;;  %v1012_v43 = vmul.f32 0.1, %v948_v35  ;;  %v1309_v44 = vadd.f32 %v1308_v40, %v1307_v36  ;;  %v1357_v45 = vadd.f32 %v1356_v41, %v1355_v37  ;;  %v1310_v46 = vpop.f32.mrb[22].mxu0  ;;  %v1358_v47 = vpop.f32.mrb[22].mxu1 }
 0x125   : > { %v1311_v50 = vpop.f32.mrb[23].mxu0  ;;  %v1359_v52 = vpop.f32.mrb[23].mxu1 }
 0x126   : > { %v1028_v48 = vsel %vm964_vm2, %v932_v34, %v996_v42  ;;  %v1044_v49 = vsel %vm980_vm3, %v948_v35, %v1012_v43  ;;  %v933_v53 = vadd.f32 %v1309_v44, %v1632_v51  ;;  %v949_v54 = vadd.f32 %v1357_v45, %v1632_v51 }
 0x127   : > { %1060 = vst [vmem:[%s1641_s8 + $0x48] sm:$0xff] %v1028_v48  ;;  %1076 = vst [vmem:[%s1641_s8 + $0xc8] sm:$0xff] %v1044_v49  ;;  %v1312_v55 = vadd.f32 %v1311_v50, %v1310_v46  ;;  %v1360_v56 = vadd.f32 %v1359_v52, %v1358_v47 }
 0x128   : > { %vm965_vm4 = vcmp.gt.f32.partialorder %v933_v53, 0.0  ;;  %v997_v57 = vmul.f32 0.1, %v933_v53  ;;  %vm981_vm5 = vcmp.gt.f32.partialorder %v949_v54, 0.0  ;;  %v1013_v58 = vmul.f32 0.1, %v949_v54 }
 0x129   : > { %v934_v59 = vadd.f32 %v1312_v55, %v1632_v51  ;;  %v950_v60 = vadd.f32 %v1360_v56, %v1632_v51 }
 0x12a   : > { %v1313_v61 = vpop.f32.mrb[24].mxu0  ;;  %v1361_v62 = vpop.f32.mrb[24].mxu1  ;;  %v1029_v63 = vsel %vm965_vm4, %v933_v53, %v997_v57  ;;  %v1045_v0 = vsel %vm981_vm5, %v949_v54, %v1013_v58 }
 0x12b   : > { %v1314_v1 = vpop.f32.mrb[25].mxu0  ;;  %v1362_v2 = vpop.f32.mrb[25].mxu1  ;;  %1061 = vst [vmem:[%s1641_s8 + $0x50] sm:$0xff] %v1029_v63  ;;  %1077 = vst [vmem:[%s1641_s8 + $0xd0] sm:$0xff] %v1045_v0  ;;  %vm966_vm6 = vcmp.gt.f32.partialorder %v934_v59, 0.0  ;;  %vm982_vm7 = vcmp.gt.f32.partialorder %v950_v60, 0.0 }
 0x12c   : > { %v998_v3 = vmul.f32 0.1, %v934_v59  ;;  %v1014_v4 = vmul.f32 0.1, %v950_v60  ;;  %v1315_v5 = vadd.f32 %v1314_v1, %v1313_v61  ;;  %v1363_v6 = vadd.f32 %v1362_v2, %v1361_v62  ;;  %v1316_v7 = vpop.f32.mrb[26].mxu0  ;;  %v1364_v8 = vpop.f32.mrb[26].mxu1 }
 0x12d   : > { %v1317_v11 = vpop.f32.mrb[27].mxu0  ;;  %v1365_v12 = vpop.f32.mrb[27].mxu1 }
 0x12e   : > { %v1030_v9 = vsel %vm966_vm6, %v934_v59, %v998_v3  ;;  %v1046_v10 = vsel %vm982_vm7, %v950_v60, %v1014_v4  ;;  %v935_v13 = vadd.f32 %v1315_v5, %v1632_v51  ;;  %v951_v14 = vadd.f32 %v1363_v6, %v1632_v51 }
 0x12f   : > { %1062 = vst [vmem:[%s1641_s8 + $0x58] sm:$0xff] %v1030_v9  ;;  %1078 = vst [vmem:[%s1641_s8 + $0xd8] sm:$0xff] %v1046_v10  ;;  %v1318_v15 = vadd.f32 %v1317_v11, %v1316_v7  ;;  %v1366_v16 = vadd.f32 %v1365_v12, %v1364_v8 }
 0x130   : > { %vm967_vm8 = vcmp.gt.f32.partialorder %v935_v13, 0.0  ;;  %v999_v17 = vmul.f32 0.1, %v935_v13  ;;  %vm983_vm9 = vcmp.gt.f32.partialorder %v951_v14, 0.0  ;;  %v1015_v18 = vmul.f32 0.1, %v951_v14 }
 0x131   : > { %v936_v19 = vadd.f32 %v1318_v15, %v1632_v51  ;;  %v952_v20 = vadd.f32 %v1366_v16, %v1632_v51 }
 0x132   : > { %v1319_v21 = vpop.f32.mrb[28].mxu0  ;;  %v1367_v22 = vpop.f32.mrb[28].mxu1  ;;  %v1031_v23 = vsel %vm967_vm8, %v935_v13, %v999_v17  ;;  %v1047_v24 = vsel %vm983_vm9, %v951_v14, %v1015_v18 }
 0x133   : > { %v1320_v25 = vpop.f32.mrb[29].mxu0  ;;  %v1368_v26 = vpop.f32.mrb[29].mxu1  ;;  %1063 = vst [vmem:[%s1641_s8 + $0x60] sm:$0xff] %v1031_v23  ;;  %1079 = vst [vmem:[%s1641_s8 + $0xe0] sm:$0xff] %v1047_v24  ;;  %vm968_vm10 = vcmp.gt.f32.partialorder %v936_v19, 0.0  ;;  %vm984_vm11 = vcmp.gt.f32.partialorder %v952_v20, 0.0 }
 0x134   : > { %v1000_v27 = vmul.f32 0.1, %v936_v19  ;;  %v1016_v28 = vmul.f32 0.1, %v952_v20  ;;  %v1321_v29 = vadd.f32 %v1320_v25, %v1319_v21  ;;  %v1369_v30 = vadd.f32 %v1368_v26, %v1367_v22  ;;  %v1322_v31 = vpop.f32.mrb[30].mxu0  ;;  %v1370_v32 = vpop.f32.mrb[30].mxu1 }
 0x135   : > { %v1323_v35 = vpop.f32.mrb[31].mxu0  ;;  %v1371_v36 = vpop.f32.mrb[31].mxu1 }
 0x136   : > { %v1032_v33 = vsel %vm968_vm10, %v936_v19, %v1000_v27  ;;  %v1048_v34 = vsel %vm984_vm11, %v952_v20, %v1016_v28  ;;  %v937_v37 = vadd.f32 %v1321_v29, %v1632_v51  ;;  %v953_v38 = vadd.f32 %v1369_v30, %v1632_v51 }
 0x137   : > { %1064 = vst [vmem:[%s1641_s8 + $0x68] sm:$0xff] %v1032_v33  ;;  %1080 = vst [vmem:[%s1641_s8 + $0xe8] sm:$0xff] %v1048_v34  ;;  %v1324_v39 = vadd.f32 %v1323_v35, %v1322_v31  ;;  %v1372_v40 = vadd.f32 %v1371_v36, %v1370_v32 }
 0x138   : > { %vm969_vm12 = vcmp.gt.f32.partialorder %v937_v37, 0.0  ;;  %v1001_v41 = vmul.f32 0.1, %v937_v37  ;;  %vm985_vm13 = vcmp.gt.f32.partialorder %v953_v38, 0.0  ;;  %v1017_v42 = vmul.f32 0.1, %v953_v38 }
 0x139   : > { %v938_v43 = vadd.f32 %v1324_v39, %v1632_v51  ;;  %v954_v44 = vadd.f32 %v1372_v40, %v1632_v51 }
 0x13a   : > { %v1033_v45 = vsel %vm969_vm12, %v937_v37, %v1001_v41  ;;  %v1049_v46 = vsel %vm985_vm13, %v953_v38, %v1017_v42 }
 0x13b   : > { %1065 = vst [vmem:[%s1641_s8 + $0x70] sm:$0xff] %v1033_v45  ;;  %1081 = vst [vmem:[%s1641_s8 + $0xf0] sm:$0xff] %v1049_v46  ;;  %vm970_vm14 = vcmp.gt.f32.partialorder %v938_v43, 0.0  ;;  %v1002_v47 = vmul.f32 0.1, %v938_v43  ;;  %vm986_vm15 = vcmp.gt.f32.partialorder %v954_v44, 0.0 }
 0x13c   : > { %v1018_v48 = vmul.f32 0.1, %v954_v44 }
 0x13d   : > { %v1034_v49 = vsel %vm970_vm14, %v938_v43, %v1002_v47 }
 0x13e   : > { %v1050_v50 = vsel %vm986_vm15, %v954_v44, %v1018_v48  ;;  %1066 = vst [vmem:[%s1641_s8 + $0x78] sm:$0xff] %v1034_v49 }
 0x13f   : > { %1082 = vst [vmem:[%s1641_s8 + $0xf8] sm:$0xff] %v1050_v50 }
 0x140 PF: > { %s13_s14 = sadd.s32 1, %s1499_s14   ;;  %s1718_s12 = smov %s1495_s13 }
 0x141   : > { %p10_p5 = scmp.ge.s32.totalorder %s13_s14, 4   ;;  %s1719_s13 = smov %s1721_s15 }
 0x143   :  { %12 = sbr.rel (!%p10_p5) target bundleno = 2 (0x2), region = 76 }

</bundles_post_ra>
